<compile_context>
chip_gen: v6e
topology: v6e:2x2x1
jax: 0.10.0
libtpu: 0.0.40
codegen_flags: <defaults>
</compile_context>

<pallas_src>
import jax
import jax.numpy as jnp
from jax.experimental import pallas as pl
from jax.experimental.pallas import tpu as pltpu

C_IN = 336   # conv2d96 in_channels / conv2d97 out_channels
C_MID = 84   # conv2d96 out_channels / conv2d97 in_channels


def _round_up(v, m):
    return (v + m - 1) // m * m


def _choose_tm(n):
    # Multiple of 8 sublanes; aim for >= 2 grid steps so v7x's 2 TensorCores
    # both get work; cap at 1024 rows (keeps VMEM use small on every gen).
    tm = _round_up(pl.cdiv(max(n, 16), 2), 8)
    return min(tm, 1024)


def se_kernel(x_ref, w1_ref, b1_ref, w2_ref, b2_ref, o_ref):
    # x_ref: [TM, 336]   w1_ref: [336, 84] bf16   b1_ref: [1, 84] f32
    # w2_ref: [84, 336] bf16   b2_ref: [1, 336] f32   o_ref: [TM, 336]
    x = x_ref[...].astype(jnp.bfloat16)
    # conv2d96 (1x1) == matmul + bias, then ReLU
    h = jnp.dot(x, w1_ref[...], preferred_element_type=jnp.float32) + b1_ref[...]
    h = jnp.maximum(h, 0.0)
    # conv2d97 (1x1) == matmul + bias
    y = jnp.dot(h.astype(jnp.bfloat16), w2_ref[...],
                preferred_element_type=jnp.float32) + b2_ref[...]
    # exact sigmoid: exp on EUP, one divide -- free in a mem-bound kernel
    o_ref[...] = (1.0 / (1.0 + jnp.exp(-y))).astype(o_ref.dtype)


def prepare_se_params(w1, b1, w2, b2):
    """One-time (model-load) weight prep: reshape/transpose + bf16 cast.

    w1: [84, 336, 1, 1]  b1: [84]  w2: [336, 84, 1, 1]  b2: [336]
    """
    w1t = w1.reshape(C_MID, C_IN).T.astype(jnp.bfloat16)          # [336, 84]
    w2t = w2.reshape(C_IN, C_MID).T.astype(jnp.bfloat16)          # [84, 336]
    b1r = b1.astype(jnp.float32).reshape(1, C_MID)                # [1, 84]
    b2r = b2.astype(jnp.float32).reshape(1, C_IN)                 # [1, 336]
    return w1t, b1r, w2t, b2r


def se_block_prepared(x_nchw, w1t, b1r, w2t, b2r, out_dtype=None):
    """x_nchw: [N, 336, 1, 1]; prepared params from prepare_se_params.

    Returns [N, 336, 1, 1].  Pass out_dtype=jnp.bfloat16 if the downstream
    consumer of the SE gate is bf16 (halves output HBM traffic).
    """
    N = x_nchw.shape[0]
    if out_dtype is None:
        out_dtype = x_nchw.dtype

    x2d = x_nchw.reshape(N, C_IN)   # free: contiguous reshape, no pad/copy

    TM = _choose_tm(N)
    grid = (pl.cdiv(N, TM),)

    out2d = pl.pallas_call(
        se_kernel,
        out_shape=jax.ShapeDtypeStruct((N, C_IN), out_dtype),
        grid=grid,
        in_specs=[
            pl.BlockSpec((TM, C_IN), lambda i: (i, 0)),     # x tile (pipelined)
            pl.BlockSpec((C_IN, C_MID), lambda i: (0, 0)),  # w1 (VMEM-resident)
            pl.BlockSpec((1, C_MID), lambda i: (0, 0)),     # b1
            pl.BlockSpec((C_MID, C_IN), lambda i: (0, 0)),  # w2
            pl.BlockSpec((1, C_IN), lambda i: (0, 0)),      # b2
        ],
        out_specs=pl.BlockSpec((TM, C_IN), lambda i: (i, 0)),
        compiler_params=pltpu.CompilerParams(
            dimension_semantics=("parallel",),
            vmem_limit_bytes=32 * 1024 * 1024),
    )(x2d, w1t, b1r, w2t, b2r)

    return out2d.reshape(N, C_IN, 1, 1)


def se_block(x_nchw, w1, b1, w2, b2):
    """Convenience wrapper: prep + kernel. For repeated calls, hoist
    prepare_se_params() out of the hot path."""
    params = prepare_se_params(w1, b1, w2, b2)
    return se_block_prepared(x_nchw, *params)


def _reference(x_nchw, w1, b1, w2, b2):
    x2d = x_nchw.reshape(x_nchw.shape[0], C_IN).astype(jnp.float32)
    h = jnp.maximum(x2d @ w1.reshape(C_MID, C_IN).T + b1, 0.0)
    y = h @ w2.reshape(C_IN, C_MID).T + b2
    return jax.nn.sigmoid(y).reshape(x_nchw.shape[0], C_IN, 1, 1)


if __name__ == "__main__":
    key = jax.random.PRNGKey(0)
    kx, kw1, kb1, kw2, kb2 = jax.random.split(key, 5)

    N = 2  # small batch; module example used N=1
    x = jax.random.normal(kx, (N, C_IN, 1, 1), dtype=jnp.float32)
    # deterministic synthetic parameters (not a checkpoint)
    w1 = jax.random.normal(kw1, (C_MID, C_IN, 1, 1), dtype=jnp.float32) * 0.05
    b1 = jax.random.normal(kb1, (C_MID,), dtype=jnp.float32) * 0.05
    w2 = jax.random.normal(kw2, (C_IN, C_MID, 1, 1), dtype=jnp.float32) * 0.05
    b2 = jax.random.normal(kb2, (C_IN,), dtype=jnp.float32) * 0.05

    params = prepare_se_params(w1, b1, w2, b2)   # one-time weight prep
    out = se_block_prepared(x, *params)
    jax.block_until_ready(out)

    ref = _reference(x, w1, b1, w2, b2)
    assert out.shape == (N, C_IN, 1, 1)
    # bf16 MXU inputs -> compare at a correspondingly looser (but still
    # post-sigmoid tight) tolerance vs the f32 reference.
    assert jnp.allclose(out, ref, atol=2e-2, rtol=2e-2), float(
        jnp.max(jnp.abs(out - ref)))
    print("KERNEL_OK")
</pallas_src>

<mosaic_0001>
module attributes {stable_mosaic.version = 11 : i64} {
  func.func @se_kernel(%arg0: i32, %arg1: memref<8x336xf32, #tpu.memory_space<vmem>>, %arg2: memref<336x84xbf16, #tpu.memory_space<vmem>>, %arg3: memref<1x84xf32, #tpu.memory_space<vmem>>, %arg4: memref<84x336xbf16, #tpu.memory_space<vmem>>, %arg5: memref<1x336xf32, #tpu.memory_space<vmem>>, %arg6: memref<8x336xf32, #tpu.memory_space<vmem>>) attributes {dimension_semantics = [#tpu.dimension_semantics<parallel>], iteration_bounds = array<i64: 1>, scalar_prefetch = 0 : i64, scratch_operands = 0 : i64, tpu.core_type = #tpu.core_type<tc>, window_params = [{transform_indices = @transform_0, window_bounds = array<i64: 8, 336>}, {pipeline_mode = #tpu.pipeline_mode<synchronous>, transform_indices = @transform_1, window_bounds = array<i64: 336, 84>}, {pipeline_mode = #tpu.pipeline_mode<synchronous>, transform_indices = @transform_2, window_bounds = array<i64: 1, 84>}, {pipeline_mode = #tpu.pipeline_mode<synchronous>, transform_indices = @transform_3, window_bounds = array<i64: 84, 336>}, {pipeline_mode = #tpu.pipeline_mode<synchronous>, transform_indices = @transform_4, window_bounds = array<i64: 1, 336>}, {transform_indices = @transform_5, window_bounds = array<i64: 8, 336>}]} {
    %c0 = arith.constant 0 : index
    %c0_0 = arith.constant 0 : index
    %0 = vector.load %arg1[%c0, %c0_0] : memref<8x336xf32, #tpu.memory_space<vmem>>, vector<8x336xf32>
    %1 = arith.truncf %0 : vector<8x336xf32> to vector<8x336xbf16>
    %c0_1 = arith.constant 0 : index
    %c0_2 = arith.constant 0 : index
    %2 = vector.load %arg2[%c0_1, %c0_2] : memref<336x84xbf16, #tpu.memory_space<vmem>>, vector<336x84xbf16>
    %cst = arith.constant dense<0.000000e+00> : vector<8x84xf32>
    %3 = tpu.matmul %1, %2, %cst {dimension_numbers = #tpu.dot_dimension_numbers<[1], [0], [0], [1], [0, 0, 1, 1], [], []>} : vector<8x336xbf16>, vector<336x84xbf16>, vector<8x84xf32> -> vector<8x84xf32>
    %c0_3 = arith.constant 0 : index
    %c0_4 = arith.constant 0 : index
    %4 = vector.load %arg3[%c0_3, %c0_4] : memref<1x84xf32, #tpu.memory_space<vmem>>, vector<1x84xf32>
    %5 = vector.broadcast %4 : vector<1x84xf32> to vector<8x84xf32>
    %6 = arith.addf %3, %5 : vector<8x84xf32>
    %cst_5 = arith.constant 0.000000e+00 : f32
    %7 = vector.broadcast %cst_5 : f32 to vector<8x84xf32>
    %8 = arith.maximumf %6, %7 : vector<8x84xf32>
    %9 = arith.truncf %8 : vector<8x84xf32> to vector<8x84xbf16>
    %c0_6 = arith.constant 0 : index
    %c0_7 = arith.constant 0 : index
    %10 = vector.load %arg4[%c0_6, %c0_7] : memref<84x336xbf16, #tpu.memory_space<vmem>>, vector<84x336xbf16>
    %cst_8 = arith.constant dense<0.000000e+00> : vector<8x336xf32>
    %11 = tpu.matmul %9, %10, %cst_8 {dimension_numbers = #tpu.dot_dimension_numbers<[1], [0], [0], [1], [0, 0, 1, 1], [], []>} : vector<8x84xbf16>, vector<84x336xbf16>, vector<8x336xf32> -> vector<8x336xf32>
    %c0_9 = arith.constant 0 : index
    %c0_10 = arith.constant 0 : index
    %12 = vector.load %arg5[%c0_9, %c0_10] : memref<1x336xf32, #tpu.memory_space<vmem>>, vector<1x336xf32>
    %13 = vector.broadcast %12 : vector<1x336xf32> to vector<8x336xf32>
    %14 = arith.addf %11, %13 : vector<8x336xf32>
    %cst_11 = arith.constant 0.000000e+00 : f32
    %15 = vector.broadcast %cst_11 : f32 to vector<8x336xf32>
    %16 = arith.subf %15, %14 : vector<8x336xf32>
    %17 = math.exp %16 : vector<8x336xf32>
    %cst_12 = arith.constant 1.000000e+00 : f32
    %18 = vector.broadcast %cst_12 : f32 to vector<8x336xf32>
    %19 = arith.addf %18, %17 : vector<8x336xf32>
    %cst_13 = arith.constant 1.000000e+00 : f32
    %20 = vector.broadcast %cst_13 : f32 to vector<8x336xf32>
    %21 = arith.divf %20, %19 : vector<8x336xf32>
    %c0_14 = arith.constant 0 : index
    %c0_15 = arith.constant 0 : index
    %22 = vector.load %arg6[%c0_14, %c0_15] : memref<8x336xf32, #tpu.memory_space<vmem>>, vector<8x336xf32>
    tpu.vector_store %arg6[%c0_14, %c0_15], %21 {strides = array<i32>} : memref<8x336xf32, #tpu.memory_space<vmem>>, vector<8x336xf32>,
    return
  }
  func.func @transform_0(%arg0: i32) -> (i32, i32) {
    %c0_i32 = arith.constant 0 : i32
    %c0_i32_0 = arith.constant 0 : i32
    return %arg0, %c0_i32 : i32, i32
  }
  func.func @transform_1(%arg0: i32) -> (i32, i32) {
    %c0_i32 = arith.constant 0 : i32
    %c0_i32_0 = arith.constant 0 : i32
    %c0_i32_1 = arith.constant 0 : i32
    return %c0_i32, %c0_i32_0 : i32, i32
  }
  func.func @transform_2(%arg0: i32) -> (i32, i32) {
    %c0_i32 = arith.constant 0 : i32
    %c0_i32_0 = arith.constant 0 : i32
    %c0_i32_1 = arith.constant 0 : i32
    return %c0_i32, %c0_i32_0 : i32, i32
  }
  func.func @transform_3(%arg0: i32) -> (i32, i32) {
    %c0_i32 = arith.constant 0 : i32
    %c0_i32_0 = arith.constant 0 : i32
    %c0_i32_1 = arith.constant 0 : i32
    return %c0_i32, %c0_i32_0 : i32, i32
  }
  func.func @transform_4(%arg0: i32) -> (i32, i32) {
    %c0_i32 = arith.constant 0 : i32
    %c0_i32_0 = arith.constant 0 : i32
    %c0_i32_1 = arith.constant 0 : i32
    return %c0_i32, %c0_i32_0 : i32, i32
  }
  func.func @transform_5(%arg0: i32) -> (i32, i32) {
    %c0_i32 = arith.constant 0 : i32
    %c0_i32_0 = arith.constant 0 : i32
    return %arg0, %c0_i32 : i32, i32
  }
}

</mosaic_0001>

<bundles_post_ra>
// kernel: tpu_custom_call.1
= control target key start
LH: loop header
LB: loop body
LE: loop exit
PB: predicated region body
PF: predicated region fallthrough
CT: control target
= control target key end

     0   :  { %10 = vsyncpa [#allocation3], 0  ;;  %v838_v2 = vmov 0.0   ;;  %vm839_vm0 = vmmov 0   ;;  %v37_v17 = vlaneseq  ;;  %v840_v24 = vmov 1983009808   ;;  %s1045_s0 = inlined_call_operand.vmem [shape: f32[2,336], index: 0, kind: input, shape index: {}]   ;;  %s1046_s1 = inlined_call_operand.vmem [shape: bf16[336,84], index: 1, kind: input, shape index: {}]   ;;  %s1047_s2 = inlined_call_operand.vmem [shape: f32[1,84], index: 2, kind: input, shape index: {}]   ;;  %s1048_s3 = inlined_call_operand.vmem [shape: bf16[84,336], index: 3, kind: input, shape index: {}]   ;;  %s1049_s4 = inlined_call_operand.vmem [shape: f32[1,336], index: 4, kind: input, shape index: {}]   ;;  %s1050_s5 = inlined_call_operand.hbm [shape: f32[2,336], index: 5, kind: output, shape index: {}]  }
   0x1   :  { %v754_v0 = vld [vmem:[%s1046_s1 + $0x78] sm:$0xff]   ;;  %717 = vmatprep.subr.bf16.mxu1 %v838_v2  ;;  %v756_v3 = vld [vmem:[%s1046_s1 + $0x70] sm:$0xff]   ;;  %727 = vmatprep.mubr.msk.bf16.mxu1 %vm839_vm0, %v838_v2  ;;  %v758_v5 = vld [vmem:[%s1046_s1 + $0x68] sm:$0xff]   ;;  %v35_v25 = vunpack.c.l.s4 %v840_v24  ;;  %vm463_vm1 = vcmask 1041408   ;;  %vm246_vm2 = vcmask 654336   ;;  %v841_v63 = vmov 0  }
   0x2   :  { %v755_v1 = vld [vmem:[%s1046_s1 + $0x38] sm:$0xff]   ;;  %682 = vmatprep.subr.bf16.mxu0 %v754_v0  ;;  %v757_v4 = vld [vmem:[%s1046_s1 + $0x30] sm:$0xff]   ;;  %v759_v6 = vld [vmem:[%s1046_s1 + $0x28] sm:$0xff]   ;;  %v942_v22 = vshrl.u32 %v37_v17, 7  ;;  %vm459_vm3 = vcmask 687104   ;;  %vm614_vm4 = vcmask 1043458  }
   0x3   :  { %683 = vmatpush3.bf16.msra.mxu0 %v755_v1  ;;  %v760_v7 = vld [vmem:[%s1046_s1 + $0x60] sm:$0xff]   ;;  %v765_v10 = vld [vmem:[%s1046_s1 + $0x98] sm:$0xff]   ;;  %v768_v12 = vld [vmem:[%s1046_s1 + $0x90] sm:$0xff]   ;;  %v36_v31 = vunpack.c.0.s8 %v35_v25  ;;  %vm616_vm6 = vcmask 652292  }
   0x4   :  { %684 = vmatprep.subr.bf16.mxu0 %v756_v3  ;;  %v762_v8 = vld [vmem:[%s1046_s1 + $0xa0] sm:$0xff]   ;;  %v763_v11 = vld [vmem:[%s1046_s1 + $0x58] sm:$0xff]   ;;  %v766_v14 = vld [vmem:[%s1046_s1 + $0x50] sm:$0xff]   ;;  %v362_v17 = vsub.s32 1, %v942_v22 }
   0x5   :  { %v761_v9 = vld [vmem:[%s1046_s1 + $0x20] sm:$0xff]   ;;  %718 = vmatpush3.bf16.msra.mxu1 %v762_v8  ;;  %v764_v13 = vld [vmem:[%s1046_s1 + $0x18] sm:$0xff]   ;;  %v771_v15 = vld [vmem:[%s1046_s1 + $0x88] sm:$0xff]   ;;  %v964_v33 = vsub.s32 %v36_v31, %v942_v22 }
   0x6   :  { %719 = vmatprep.subr.bf16.mxu1 %v838_v2  ;;  %v767_v16 = vld [vmem:[%s1046_s1 + $0x10] sm:$0xff]   ;;  %v769_v18 = vld [vmem:[%s1046_s1 + $0x48] sm:$0xff]   ;;  %v774_v19 = vld [vmem:[%s1046_s1 + $0x80] sm:$0xff]  }
   0x7   :  { %685 = vmatpush3.bf16.msra.mxu0 %v757_v4  ;;  %v770_v20 = vld [vmem:[%s1046_s1 + $0x8] sm:$0xff]   ;;  %v772_v21 = vld [vmem:[%s1046_s1 + $0x40] sm:$0xff]   ;;  %v352_v26 = vld [vmem:[%s1048_s3 + $0x78] sm:$0x33] }
   0x8   :  { %686 = vmatprep.subr.bf16.mxu0 %v758_v5  ;;  %v777_v23 = vld [vmem:[%s1045_s0 + $0x4] ss:$6 sps:$4 sm:$0x33]   ;;  %v775_v27 = vld [vmem:[%s1045_s0] ss:$6 sps:$4 sm:$0xff]   ;;  %v677_v29 = vcombine.high %v352_v26, %v352_v26  ;;  %v676_v34 = vcombine.low %v352_v26, %v352_v26  ;;  %vm615_vm5 = vmor %vm614_vm4, %vm463_vm1 }
   0x9   :  { %720 = vmatpush3.bf16.msra.mxu1 %v765_v10  ;;  %v780_v28 = vld [vmem:[%s1045_s0 + $0x10] ss:$6 sps:$4 sm:$0x33]   ;;  %v778_v30 = vld [vmem:[%s1045_s0 + $0xc] ss:$6 sps:$4 sm:$0xff]   ;;  %v773_v32 = vld [vmem:[%s1046_s1] sm:$0xff]   ;;  %v40_v36 = vrot.slane %v775_v27, %v964_v33  ;;  %v47_v37 = vrot.slane %v777_v23, %v964_v33 }
   0xa   :  { %721 = vmatprep.subr.bf16.mxu1 %v838_v2  ;;  %v783_v35 = vld [vmem:[%s1048_s3 + $0x80] ss:$0 sps:$4 sm:$0x33]   ;;  %v54_v38 = vrot.slane %v778_v30, %v964_v33  ;;  %v61_v39 = vrot.slane %v780_v28, %v964_v33  ;;  %v465_v46 = vsel %vm463_vm1, %v676_v34, 0  ;;  %v786_v47 = vld [vmem:[%s1048_s3 + $0x64] ss:$12 sps:$4 sm:$0xff]   ;;  %vm617_vm7 = vmor %vm616_vm6, %vm615_vm5 }
   0xb   :  { %687 = vmatpush3.bf16.msra.mxu0 %v759_v6  ;;  %v471_v48 = vsel %vm463_vm1, %v783_v35, 0  ;;  %v784_v49 = vld [vmem:[%s1048_s3 + $0x60] ss:$12 sps:$4 sm:$0xff]   ;;  %v787_v50 = vld [vmem:[%s1048_s3 + $0x68] ss:$12 sps:$4 sm:$0xff]  }
   0xc   :  { %688 = vmatprep.subr.bf16.mxu0 %v760_v7  ;;  %v63_v40 = vcombine.high %v40_v36, %v54_v38  ;;  %v62_v41 = vcombine.low %v40_v36, %v54_v38  ;;  %v64_v42 = vcombine.low %v47_v37, %v61_v39  ;;  %v790_v51 = vld [vmem:[%s1048_s3 + $0x4c] ss:$12 sps:$4 sm:$0xff]   ;;  %v788_v52 = vld [vmem:[%s1048_s3 + $0x48] ss:$12 sps:$4 sm:$0xff]   ;;  %v791_v53 = vld [vmem:[%s1048_s3 + $0x50] ss:$12 sps:$4 sm:$0xff]  }
   0xd   :  { %722 = vmatpush3.bf16.msra.mxu1 %v768_v12  ;;  %v794_v54 = vld [vmem:[%s1048_s3 + $0x34] ss:$12 sps:$4 sm:$0xff]   ;;  %v792_v55 = vld [vmem:[%s1048_s3 + $0x30] ss:$12 sps:$4 sm:$0xff]   ;;  %v795_v56 = vld [vmem:[%s1048_s3 + $0x38] ss:$12 sps:$4 sm:$0xff]  }
   0xe   :  { %723 = vmatprep.subr.bf16.mxu1 %v838_v2  ;;  %v69_v43 = vpack.c.bf16 %v63_v40, %v63_v40  ;;  %v68_v44 = vpack.c.bf16 %v62_v41, %v62_v41  ;;  %v70_v45 = vpack.c.bf16 %v64_v42, %v64_v42  ;;  %v798_v57 = vld [vmem:[%s1048_s3 + $0x1c] ss:$12 sps:$4 sm:$0xff]   ;;  %v796_v58 = vld [vmem:[%s1048_s3 + $0x18] ss:$12 sps:$4 sm:$0xff]   ;;  %v799_v59 = vld [vmem:[%s1048_s3 + $0x20] ss:$12 sps:$4 sm:$0xff]  }
   0xf   :  { %689 = vmatpush3.bf16.msra.mxu0 %v761_v9  ;;  %v802_v60 = vld [vmem:[%s1048_s3 + $0x4] ss:$12 sps:$4 sm:$0xff]   ;;  %v800_v61 = vld [vmem:[%s1048_s3] ss:$12 sps:$4 sm:$0xff]   ;;  %v803_v62 = vld [vmem:[%s1048_s3 + $0x8] ss:$12 sps:$4 sm:$0xff]  }
  0x10   :  { %690 = vmatprep.subr.bf16.mxu0 %v763_v11  ;;  %282 = vmatprep.mubr.bf16.mxu0 %v69_v43 }
  0x11   :  { %724 = vmatpush3.bf16.msra.mxu1 %v771_v15  ;;  %v366_v15 = vsub.s32 2, %v942_v22 }
  0x12   :  { %725 = vmatprep.subr.bf16.mxu1 %v838_v2 }
  0x13   :  { %691 = vmatpush3.bf16.msra.mxu0 %v764_v13 }
  0x14   :  { %692 = vmatprep.subr.bf16.mxu0 %v766_v14  ;;  %v358_v14 = vsub.s32 0, %v942_v22 }
  0x15   :  { %726 = vmatpush3.bf16.msra.mxu1 %v774_v19 }
  0x16   :  { %679 = vmatprep.subr.msk.bf16.mxu1 %vm463_vm1, %v677_v29 }
  0x17   :  { %693 = vmatpush3.bf16.msra.mxu0 %v767_v16  ;;  %v354_v16 = vld [vmem:[%s1049_s4] sm:$0x7] }
  0x18   :  { %694 = vmatprep.subr.bf16.mxu0 %v769_v18  ;;  %728 = vmatmul.mubr.msk.bf16.vlgmr.msra.gmra.mxu1 %vm246_vm2, %v70_v45  ;;  %v359_v18 = vrot.slane %v354_v16, %v358_v14  ;;  %v367_v19 = vrot.slane %v354_v16, %v366_v15 }
  0x19   :  { %478 = vmatpush1.bf16.msra.mxu1 %v465_v46  ;;  %505 = vmatprep.mubr.bf16.mxu1 %v841_v63 }
  0x1a   :  { %479 = vmatprep.subr.bf16.mxu1 %v786_v47 }
  0x1b   :  { %695 = vmatpush3.bf16.msra.mxu0 %v770_v20  ;;  %v363_v20 = vrot.slane %v354_v16, %v362_v17 }
  0x1c   :  { %696 = vmatprep.subr.bf16.mxu0 %v772_v21 }
  0x1d   :  { %480 = vmatpush1.bf16.msra.mxu1 %v784_v49 }
  0x1e   :  { %481 = vmatprep.subr.bf16.mxu1 %v790_v51 }
  0x1f   :  { %697 = vmatpush3.bf16.msra.mxu0 %v773_v32 }
  0x20   :  { %731 = vmatprep.subr.bf16.mxu0 %v838_v2 }
  0x21   :  { %482 = vmatpush1.bf16.msra.mxu1 %v788_v52 }
  0x22   :  { %283 = vmatmul.mubr.bf16.vlgmr.msra.gmra.mxu0 %v68_v44  ;;  %483 = vmatprep.subr.bf16.mxu1 %v794_v54 }
  0x23   :  { %732 = vmatpush3.bf16.msra.mxu0 %v471_v48  ;;  %743 = vmatprep.mubr.msk.bf16.mxu0 %vm839_vm0, %v838_v2 }
  0x24   :  { %733 = vmatprep.subr.bf16.mxu0 %v838_v2 }
  0x25   :  { %484 = vmatpush1.bf16.msra.mxu1 %v792_v55 }
  0x26   :  { %485 = vmatprep.subr.bf16.mxu1 %v798_v57 }
  0x27   :  { %734 = vmatpush3.bf16.msra.mxu0 %v787_v50 }
  0x28   :  { %735 = vmatprep.subr.bf16.mxu0 %v838_v2 }
  0x29   :  { %486 = vmatpush1.bf16.msra.mxu1 %v796_v58 }
  0x2a   :  { %487 = vmatprep.subr.bf16.mxu1 %v802_v60 }
  0x2b   :  { %736 = vmatpush3.bf16.msra.mxu0 %v791_v53 }
  0x2c   :  { %737 = vmatprep.subr.bf16.mxu0 %v838_v2 }
  0x2d   :  { %488 = vmatpush1.bf16.msra.mxu1 %v800_v61 }
  0x2f   :  { %738 = vmatpush3.bf16.msra.mxu0 %v795_v56 }
  0x30   :  { %739 = vmatprep.subr.bf16.mxu0 %v838_v2 }
  0x33   :  { %740 = vmatpush3.bf16.msra.mxu0 %v799_v59 }
  0x34   :  { %741 = vmatprep.subr.bf16.mxu0 %v838_v2  ;;  %v638_v2 = vld [vmem:[%s1047_s2] ss:$0 sm:$0xff] }
  0x37   :  { %742 = vmatpush3.bf16.msra.mxu0 %v803_v62 }
  0xd8   :  { %v324_v0 = vpop.f32.mrf.mxu1 }
  0xda   :  { %v729_v3 = vpop.f32.mrf.mxu1 }
  0xdc   :  { %v327_v6 = vpop.f32.mrf.mxu1 }
  0xde   :  { %v730_v9 = vpop.f32.mrf.mxu1 }
  0xe2   :  { %v698_v1 = vpop.f32.mrf.mxu0 }
  0xe4   :  { %v699_v4 = vpop.f32.mrf.mxu0 }
  0xe5   :  { %v700_v5 = vadd.f32 %v699_v4, %v698_v1 }
  0xe6   :  { %v701_v7 = vpop.f32.mrf.mxu0 }
  0xe7   :  { %v285_v8 = vadd.f32 %v700_v5, %v638_v2 }
  0xe8   :  { %v702_v10 = vpop.f32.mrf.mxu0 }
  0xe9   :  { %v325_v11 = vadd.f32 %v324_v0, %v285_v8 }
  0xeb   :  { %v330_v12 = vmax.f32 %v325_v11, 0.0 }
  0xed   :  { %v331_v13 = vpack.c.bf16 %v330_v12, %v330_v12 }
  0xef   :  { %680 = vmatmul.mubr.msk.bf16.vlgmr.msra.gmra.mxu1 %vm459_vm3, %v331_v13  ;;  %744 = vmatmul.mubr.msk.bf16.vlgmr.msra.gmra.mxu0 %vm459_vm3, %v331_v13 }
 0x1af   :  { %v507_v21 = vpop.f32.mrf.mxu1  ;;  %v548_v23 = vpop.f32.mrf.mxu0 }
 0x1b0   :  { %v508_v24 = vadd.f32 %v507_v21, %v359_v18  ;;  %v549_v25 = vadd.f32 %v548_v23, %v367_v19 }
 0x1b1   :  { %v509_v26 = vpop.f32.mrf.mxu1  ;;  %v745_v27 = vpop.f32.mrf.mxu0 }
 0x1b2   :  { %v554_v28 = vsub.f32 0.0, %v508_v24  ;;  %v556_v29 = vsub.f32 0.0, %v549_v25  ;;  %v510_v30 = vadd.f32 %v509_v26, %v363_v20 }
 0x1b3   :  { %v511_v31 = vpop.f32.mrf.mxu1  ;;  %v551_v32 = vpop.f32.mrf.mxu0 }
 0x1b4   :  { %v557_v34 = vmul.f32 1.442695, %v554_v28  ;;  %v561_v35 = vmul.f32 1.442695, %v556_v29  ;;  %v555_v36 = vsub.f32 0.0, %v510_v30 }
 0x1b5   :  { %v512_v37 = vpop.f32.mrf.mxu1  ;;  %v746_v38 = vpop.f32.mrf.mxu0 }
 0x1b6   :  { %804 = vpow2.f32 %v557_v34  ;;  %v559_v22 = vmul.f32 1.442695, %v555_v36 }
 0x1b7   :  { %806 = vpow2.f32 %v561_v35 }
 0x1b8   :  { %808 = vpow2.f32 %v559_v22 }
 0x1c3   :  { %v805_v39 = vpop.eup %804 }
 0x1c4   :  { %v807_v40 = vpop.eup %806  ;;  %v563_v41 = vadd.f32 1.0, %v805_v39 }
 0x1c5   :  { %v809_v42 = vpop.eup %808  ;;  %v565_v43 = vadd.f32 1.0, %v807_v40 }
 0x1c6   :  { %810 = vrcp.f32 %v563_v41  ;;  %v564_v44 = vadd.f32 1.0, %v809_v42 }
 0x1c7   :  { %812 = vrcp.f32 %v565_v43 }
 0x1c8   :  { %814 = vrcp.f32 %v564_v44 }
 0x1d3   :  { %v811_v45 = vpop.eup %810 }
 0x1d4   :  { %v813_v46 = vpop.eup %812 }
 0x1d5   :  { %v815_v47 = vpop.eup %814  ;;  %v577_v48 = vcombine.high %v813_v46, %v813_v46  ;;  %v598_v51 = vrot.slane %v813_v46, %v964_v33 }
 0x1d6   :  { %v575_v49 = vcombine.low %v811_v45, %v815_v47  ;;  %v576_v50 = vcombine.high %v811_v45, %v815_v47 }
 0x1d7   :  { %v605_v52 = vrot.slane %v577_v48, %v964_v33 }
 0x1d8   :  { %v584_v53 = vrot.slane %v575_v49, %v964_v33  ;;  %v591_v54 = vrot.slane %v576_v50, %v964_v33 }
 0x1da   :  { %v606_v55 = vcombine.low %v584_v53, %v598_v51  ;;  %v607_v56 = vcombine.high %v584_v53, %v598_v51  ;;  %v608_v57 = vcombine.low %v591_v54, %v605_v52  ;;  %v609_v58 = vcombine.high %v591_v54, %v605_v52 }
 0x1dc   :  { %618 = vst.msk [vmem:[#allocation2] sm:$0x3f] %vm617_vm7, %v606_v55  ;;  %619 = vst.msk [vmem:[#allocation2 + $0x6] sm:$0x3f] %vm617_vm7, %v607_v56 }
 0x1dd   :  { %620 = vst.msk [vmem:[#allocation2 + $0xc] sm:$0x3f] %vm617_vm7, %v608_v57  ;;  %621 = vst.msk [vmem:[#allocation2 + $0x12] sm:$0x3f] %vm617_vm7, %v609_v58 }
 0x1de   :  { %626 = vsyncadd [#allocation3], 288  ;;  %s842_s2 = smov [#allocation2]  }
 0x1df   :  { %s627_s4 = sshll.u32 %s842_s2, 4  ;;  %s628_s4 = int_to_ptr.vmem [resolvable:$true] %s627_s4 }
 0x1e0   :  { %s816_s26 = scalar_lea.vmem %s628_s4, 96  ;;  %s820_s27 = scalar_lea.vmem %s628_s4, 384 }
 0x1e1   :  { %p817_p0 = scmp.ne.s32.totalorder %s628_s4, %s816_s26  ;;  %p821_p1 = scmp.lt.s32.totalorder %s628_s4, %s628_s4 }
 0x1e2   :  { %p822_p2 = scmp.lt.s32.totalorder %s820_s27, %s816_s26 }
 0x1e4   :  { %p823_p3 = por %p822_p2, %p821_p1 }
 0x1e6   :  { %p824_p4 = pnand %p823_p3, %p817_p0 }
 0x1e8   :  { %827 = shalt.err (!%p824_p4)
}
 0x1e9   :  { %s843_s28 = smov 96   ;;  %s844_s29 = smov 6  }
 0x1ea   :  { %633 = dma.vmem_to_hbm [thread:$0]  %s628_s4, 96, %s1050_s5, [#allocation3], %s843_s28, %s843_s28, %s844_s29  }
 0x1eb   :  { %836 = dma.done.wait [#allocation3], 384  }
 0x1ec   :  { %837 = vsyncadd [#allocation3], 4294966912 }
 0x1ed   :  { %637 = vsyncpa [#allocation3], 1 }

</bundles_post_ra>
